<compile_context>
chip_gen: v7x
topology: tpu7x:2x2x1
jax: 0.10.0
libtpu: 0.0.40
codegen_flags: <defaults>
</compile_context>

<pallas_src>
import functools

import jax
import jax.numpy as jnp
from jax.experimental import pallas as pl
from jax.experimental.pallas import tpu as pltpu

_LANE = 128
_BLOCK_BUDGET_BYTES = 4 * 1024 * 1024   # double-buffered in+out footprint per grid step
_CL_VMEM_CAP_BYTES = 8 * 1024 * 1024    # hard cap before channels-last path falls back
_TARGET_GRID_STEPS = 8                  # keep >= ~8 steps so the pipeline / megacore stay fed


def _round_up(x: int, m: int) -> int:
    return ((x + m - 1) // m) * m


def _sublane(itemsize: int) -> int:
    # VMEM second-minor tiling granularity (f32: 8, bf16: 16, int8/fp8: 32).
    return 8 * max(1, 4 // itemsize)


# -----------------------------------------------------------------------------
# Kernels: pure data movement. Interior + 4 halo strips + 4 corners, all sourced
# straight from the input block (no concatenate, no o_ref readback, no big
# materialized value).
# -----------------------------------------------------------------------------

def _pad_kernel_nchw(x_ref, o_ref, *, pad_len: int):
    """x_ref: (Cblk, H, W); o_ref: (Cblk, H+2p, W+2p). Lane axis = W."""
    p = pad_len
    _, H, W = x_ref.shape
    # Interior: the bulk of the bytes, one sub-slice store.
    o_ref[:, p:p + H, p:p + W] = x_ref[...]
    # Row halos (circular wrap along H), interior columns.
    o_ref[:, 0:p, p:p + W] = x_ref[:, H - p:H, :]
    o_ref[:, p + H:p + H + p, p:p + W] = x_ref[:, 0:p, :]
    # Column halos (circular wrap along W), sourced from x_ref (no o_ref readback).
    o_ref[:, p:p + H, 0:p] = x_ref[:, :, W - p:W]
    o_ref[:, p:p + H, p + W:p + W + p] = x_ref[:, :, 0:p]
    # Corners.
    o_ref[:, 0:p, 0:p] = x_ref[:, H - p:H, W - p:W]
    o_ref[:, 0:p, p + W:p + W + p] = x_ref[:, H - p:H, 0:p]
    o_ref[:, p + H:p + H + p, 0:p] = x_ref[:, 0:p, W - p:W]
    o_ref[:, p + H:p + H + p, p + W:p + W + p] = x_ref[:, 0:p, 0:p]


def _pad_kernel_cl(x_ref, o_ref, *, pad_len: int):
    """x_ref: (H, W, Cblk); o_ref: (H+2p, W+2p, Cblk). Lane axis = channels (full width)."""
    p = pad_len
    H, W, _ = x_ref.shape
    o_ref[p:p + H, p:p + W, :] = x_ref[...]
    o_ref[0:p, p:p + W, :] = x_ref[H - p:H, :, :]
    o_ref[p + H:p + H + p, p:p + W, :] = x_ref[0:p, :, :]
    o_ref[p:p + H, 0:p, :] = x_ref[:, W - p:W, :]
    o_ref[p:p + H, p + W:p + W + p, :] = x_ref[:, 0:p, :]
    o_ref[0:p, 0:p, :] = x_ref[H - p:H, W - p:W, :]
    o_ref[0:p, p + W:p + W + p, :] = x_ref[H - p:H, 0:p, :]
    o_ref[p + H:p + H + p, 0:p, :] = x_ref[0:p, W - p:W, :]
    o_ref[p + H:p + H + p, p + W:p + W + p, :] = x_ref[0:p, 0:p, :]


# -----------------------------------------------------------------------------
# Block sizing (VMEM budget + minimum grid-step count, cdiv grids).
# -----------------------------------------------------------------------------

def _pick_leading_cblk(nc: int, per_c_bytes: int) -> int:
    """Channel block on a leading (non lane/sublane) axis: any positive size is legal."""
    budget_cap = max(1, _BLOCK_BUDGET_BYTES // per_c_bytes)
    steps_cap = max(1, pl.cdiv(nc, _TARGET_GRID_STEPS))
    return max(1, min(nc, budget_cap, steps_cap))


def _pick_lane_cblk(nc: int, per_c_bytes: int) -> int:
    """Channel block on the lane axis: must be a multiple of 128 or the full extent."""
    budget_cap = max(1, _BLOCK_BUDGET_BYTES // per_c_bytes)
    steps_cap = max(1, pl.cdiv(nc, _TARGET_GRID_STEPS))
    cblk = min(budget_cap, steps_cap)
    cblk = max(cblk, _LANE)            # never narrower than one lane width
    cblk = (cblk // _LANE) * _LANE     # lane-aligned -> unmasked full-width stores
    return nc if cblk >= nc else cblk


# -----------------------------------------------------------------------------
# pallas_call wrappers.
# -----------------------------------------------------------------------------

def _pad_nchw(x_flat: jax.Array, pad_len: int) -> jax.Array:
    """(NC, H, W) -> (NC, H+2p, W+2p)."""
    NC, H, W = x_flat.shape
    p = pad_len
    Ho, Wo = H + 2 * p, W + 2 * p
    itemsize = jnp.dtype(x_flat.dtype).itemsize
    sub = _sublane(itemsize)
    per_c = 2 * (_round_up(H, sub) * _round_up(W, _LANE)
                 + _round_up(Ho, sub) * _round_up(Wo, _LANE)) * itemsize
    cblk = _pick_leading_cblk(NC, per_c)
    grid = (pl.cdiv(NC, cblk),)
    return pl.pallas_call(
        functools.partial(_pad_kernel_nchw, pad_len=p),
        out_shape=jax.ShapeDtypeStruct((NC, Ho, Wo), x_flat.dtype),
        grid_spec=pltpu.PrefetchScalarGridSpec(
            num_scalar_prefetch=0,
            grid=grid,
            in_specs=[pl.BlockSpec((cblk, H, W), lambda i: (i, 0, 0))],
            out_specs=pl.BlockSpec((cblk, Ho, Wo), lambda i: (i, 0, 0)),
        ),
        compiler_params=pltpu.CompilerParams(dimension_semantics=("parallel",)),
        cost_estimate=pl.CostEstimate(
            flops=0, transcendentals=0,
            bytes_accessed=NC * (H * W + Ho * Wo) * itemsize),
    )(x_flat)


def _pad_channels_last(x_cl: jax.Array, pad_len: int) -> jax.Array:
    """(H, W, NC) -> (H+2p, W+2p, NC); channels live on the lane axis."""
    H, W, NC = x_cl.shape
    p = pad_len
    Ho, Wo = H + 2 * p, W + 2 * p
    itemsize = jnp.dtype(x_cl.dtype).itemsize
    sub = _sublane(itemsize)
    per_c = 2 * (H * _round_up(W, sub) + Ho * _round_up(Wo, sub)) * itemsize
    cblk = _pick_lane_cblk(NC, per_c)
    grid = (pl.cdiv(NC, cblk),)
    return pl.pallas_call(
        functools.partial(_pad_kernel_cl, pad_len=p),
        out_shape=jax.ShapeDtypeStruct((Ho, Wo, NC), x_cl.dtype),
        grid_spec=pltpu.PrefetchScalarGridSpec(
            num_scalar_prefetch=0,
            grid=grid,
            in_specs=[pl.BlockSpec((H, W, cblk), lambda i: (0, 0, i))],
            out_specs=pl.BlockSpec((Ho, Wo, cblk), lambda i: (0, 0, i)),
        ),
        compiler_params=pltpu.CompilerParams(dimension_semantics=("parallel",)),
        cost_estimate=pl.CostEstimate(
            flops=0, transcendentals=0,
            bytes_accessed=NC * (H * W + Ho * Wo) * itemsize),
    )(x_cl)


def padding_circular(x: jax.Array, kernel_size: int) -> jax.Array:
    """Pallas equivalent of PaddingCircular(kernel_size).forward(x); x is NCHW."""
    pad_len = kernel_size // 2
    if pad_len == 0:
        return x
    N, C, H, W = x.shape
    if pad_len > min(H, W):
        # PyTorch circular pad also requires pad <= input size per dim.
        raise ValueError(
            f"pad_len={pad_len} must be <= min(H, W)={min(H, W)} for circular pad")

    Ho, Wo = H + 2 * pad_len, W + 2 * pad_len
    itemsize = jnp.dtype(x.dtype).itemsize
    NC = N * C
    x_flat = x.reshape(NC, H, W)

    # Lane-density heuristic: use the channels-last layout only when the spatial width
    # is lane-sparse (W < 128) AND there are enough fused channels to fill a 128-lane
    # block AND its VMEM footprint stays small. Otherwise NCHW is used directly.
    sub = _sublane(itemsize)
    per_c_cl = 2 * (H * _round_up(W, sub) + Ho * _round_up(Wo, sub)) * itemsize
    use_cl = (W < _LANE and NC >= _LANE and per_c_cl * _LANE <= _CL_VMEM_CAP_BYTES)

    if use_cl:
        # Wrapper transposes are layout plumbing only; NHWC callers can call
        # _pad_channels_last directly and skip them.
        x_cl = jnp.transpose(x_flat, (1, 2, 0))
        out_cl = _pad_channels_last(x_cl, pad_len)
        out_flat = jnp.transpose(out_cl, (2, 0, 1))
    else:
        out_flat = _pad_nchw(x_flat, pad_len)

    return out_flat.reshape(N, C, Ho, Wo)


if __name__ == "__main__":
    key = jax.random.PRNGKey(0)
    k0, k1, k2 = jax.random.split(key, 3)

    def check(shape, kernel_size, k):
        x = jax.random.normal(k, shape, dtype=jnp.float32)
        out = jax.block_until_ready(padding_circular(x, kernel_size))
        p = kernel_size // 2
        ref = jnp.pad(x, ((0, 0), (0, 0), (p, p), (p, p)), mode="wrap")
        assert out.shape == ref.shape, (out.shape, ref.shape)
        assert jnp.allclose(out, ref), f"mismatch for shape={shape} k={kernel_size}"

    # Small NCHW shape matching the module spec (few channels -> NCHW path).
    check((2, 4, 16, 16), 3, k0)
    # Lane-dense NCHW path (W >= 128), pad_len = 2.
    check((1, 3, 8, 128), 5, k1)
    # Channels-last path with a ragged cdiv grid (NC = 200, cblk = 128).
    check((2, 100, 16, 16), 3, k2)

    print("KERNEL_OK")
</pallas_src>

<mosaic_0001>
module attributes {stable_mosaic.version = 11 : i64} {
  func.func @_pad_kernel_nchw(%arg0: i32, %arg1: memref<1x16x16xf32, #tpu.memory_space<vmem>>, %arg2: memref<1x18x18xf32, #tpu.memory_space<vmem>>) attributes {dimension_semantics = [#tpu.dimension_semantics<parallel>], iteration_bounds = array<i64: 8>, scalar_prefetch = 0 : i64, scratch_operands = 0 : i64, tpu.core_type = #tpu.core_type<tc>, window_params = [{transform_indices = @transform_0, window_bounds = array<i64: 1, 16, 16>}, {transform_indices = @transform_1, window_bounds = array<i64: 1, 18, 18>}]} {
    %c0 = arith.constant 0 : index
    %c0_0 = arith.constant 0 : index
    %c0_1 = arith.constant 0 : index
    %0 = vector.load %arg1[%c0, %c0_0, %c0_1] : memref<1x16x16xf32, #tpu.memory_space<vmem>>, vector<1x16x16xf32>
    %c0_2 = arith.constant 0 : index
    %c1 = arith.constant 1 : index
    %c1_3 = arith.constant 1 : index
    %1 = vector.load %arg2[%c0_2, %c1, %c1_3] : memref<1x18x18xf32, #tpu.memory_space<vmem>>, vector<1x16x16xf32>
    tpu.vector_store %arg2[%c0_2, %c1, %c1_3], %0 {strides = array<i32>} : memref<1x18x18xf32, #tpu.memory_space<vmem>>, vector<1x16x16xf32>,
    %c0_4 = arith.constant 0 : index
    %c15 = arith.constant 15 : index
    %c0_5 = arith.constant 0 : index
    %2 = vector.load %arg1[%c0_4, %c15, %c0_5] : memref<1x16x16xf32, #tpu.memory_space<vmem>>, vector<1x1x16xf32>
    %c0_6 = arith.constant 0 : index
    %c0_7 = arith.constant 0 : index
    %c1_8 = arith.constant 1 : index
    %3 = vector.load %arg2[%c0_6, %c0_7, %c1_8] : memref<1x18x18xf32, #tpu.memory_space<vmem>>, vector<1x1x16xf32>
    tpu.vector_store %arg2[%c0_6, %c0_7, %c1_8], %2 {strides = array<i32>} : memref<1x18x18xf32, #tpu.memory_space<vmem>>, vector<1x1x16xf32>,
    %c0_9 = arith.constant 0 : index
    %c0_10 = arith.constant 0 : index
    %c0_11 = arith.constant 0 : index
    %4 = vector.load %arg1[%c0_9, %c0_10, %c0_11] : memref<1x16x16xf32, #tpu.memory_space<vmem>>, vector<1x1x16xf32>
    %c0_12 = arith.constant 0 : index
    %c17 = arith.constant 17 : index
    %c1_13 = arith.constant 1 : index
    %5 = vector.load %arg2[%c0_12, %c17, %c1_13] : memref<1x18x18xf32, #tpu.memory_space<vmem>>, vector<1x1x16xf32>
    tpu.vector_store %arg2[%c0_12, %c17, %c1_13], %4 {strides = array<i32>} : memref<1x18x18xf32, #tpu.memory_space<vmem>>, vector<1x1x16xf32>,
    %c0_14 = arith.constant 0 : index
    %c0_15 = arith.constant 0 : index
    %c15_16 = arith.constant 15 : index
    %6 = vector.load %arg1[%c0_14, %c0_15, %c15_16] : memref<1x16x16xf32, #tpu.memory_space<vmem>>, vector<1x16x1xf32>
    %c0_17 = arith.constant 0 : index
    %c1_18 = arith.constant 1 : index
    %c0_19 = arith.constant 0 : index
    %7 = vector.load %arg2[%c0_17, %c1_18, %c0_19] : memref<1x18x18xf32, #tpu.memory_space<vmem>>, vector<1x16x1xf32>
    tpu.vector_store %arg2[%c0_17, %c1_18, %c0_19], %6 {strides = array<i32>} : memref<1x18x18xf32, #tpu.memory_space<vmem>>, vector<1x16x1xf32>,
    %c0_20 = arith.constant 0 : index
    %c0_21 = arith.constant 0 : index
    %c0_22 = arith.constant 0 : index
    %8 = vector.load %arg1[%c0_20, %c0_21, %c0_22] : memref<1x16x16xf32, #tpu.memory_space<vmem>>, vector<1x16x1xf32>
    %c0_23 = arith.constant 0 : index
    %c1_24 = arith.constant 1 : index
    %c17_25 = arith.constant 17 : index
    %9 = vector.load %arg2[%c0_23, %c1_24, %c17_25] : memref<1x18x18xf32, #tpu.memory_space<vmem>>, vector<1x16x1xf32>
    tpu.vector_store %arg2[%c0_23, %c1_24, %c17_25], %8 {strides = array<i32>} : memref<1x18x18xf32, #tpu.memory_space<vmem>>, vector<1x16x1xf32>,
    %c0_26 = arith.constant 0 : index
    %c15_27 = arith.constant 15 : index
    %c15_28 = arith.constant 15 : index
    %10 = vector.load %arg1[%c0_26, %c15_27, %c15_28] : memref<1x16x16xf32, #tpu.memory_space<vmem>>, vector<1x1x1xf32>
    %c0_29 = arith.constant 0 : index
    %c0_30 = arith.constant 0 : index
    %c0_31 = arith.constant 0 : index
    %11 = vector.load %arg2[%c0_29, %c0_30, %c0_31] : memref<1x18x18xf32, #tpu.memory_space<vmem>>, vector<1x1x1xf32>
    tpu.vector_store %arg2[%c0_29, %c0_30, %c0_31], %10 {strides = array<i32>} : memref<1x18x18xf32, #tpu.memory_space<vmem>>, vector<1x1x1xf32>,
    %c0_32 = arith.constant 0 : index
    %c15_33 = arith.constant 15 : index
    %c0_34 = arith.constant 0 : index
    %12 = vector.load %arg1[%c0_32, %c15_33, %c0_34] : memref<1x16x16xf32, #tpu.memory_space<vmem>>, vector<1x1x1xf32>
    %c0_35 = arith.constant 0 : index
    %c0_36 = arith.constant 0 : index
    %c17_37 = arith.constant 17 : index
    %13 = vector.load %arg2[%c0_35, %c0_36, %c17_37] : memref<1x18x18xf32, #tpu.memory_space<vmem>>, vector<1x1x1xf32>
    tpu.vector_store %arg2[%c0_35, %c0_36, %c17_37], %12 {strides = array<i32>} : memref<1x18x18xf32, #tpu.memory_space<vmem>>, vector<1x1x1xf32>,
    %c0_38 = arith.constant 0 : index
    %c0_39 = arith.constant 0 : index
    %c15_40 = arith.constant 15 : index
    %14 = vector.load %arg1[%c0_38, %c0_39, %c15_40] : memref<1x16x16xf32, #tpu.memory_space<vmem>>, vector<1x1x1xf32>
    %c0_41 = arith.constant 0 : index
    %c17_42 = arith.constant 17 : index
    %c0_43 = arith.constant 0 : index
    %15 = vector.load %arg2[%c0_41, %c17_42, %c0_43] : memref<1x18x18xf32, #tpu.memory_space<vmem>>, vector<1x1x1xf32>
    tpu.vector_store %arg2[%c0_41, %c17_42, %c0_43], %14 {strides = array<i32>} : memref<1x18x18xf32, #tpu.memory_space<vmem>>, vector<1x1x1xf32>,
    %c0_44 = arith.constant 0 : index
    %c0_45 = arith.constant 0 : index
    %c0_46 = arith.constant 0 : index
    %16 = vector.load %arg1[%c0_44, %c0_45, %c0_46] : memref<1x16x16xf32, #tpu.memory_space<vmem>>, vector<1x1x1xf32>
    %c0_47 = arith.constant 0 : index
    %c17_48 = arith.constant 17 : index
    %c17_49 = arith.constant 17 : index
    %17 = vector.load %arg2[%c0_47, %c17_48, %c17_49] : memref<1x18x18xf32, #tpu.memory_space<vmem>>, vector<1x1x1xf32>
    tpu.vector_store %arg2[%c0_47, %c17_48, %c17_49], %16 {strides = array<i32>} : memref<1x18x18xf32, #tpu.memory_space<vmem>>, vector<1x1x1xf32>,
    return
  }
  func.func @transform_0(%arg0: i32) -> (i32, i32, i32) {
    %c0_i32 = arith.constant 0 : i32
    %c0_i32_0 = arith.constant 0 : i32
    %c0_i32_1 = arith.constant 0 : i32
    return %arg0, %c0_i32, %c0_i32_0 : i32, i32, i32
  }
  func.func @transform_1(%arg0: i32) -> (i32, i32, i32) {
    %c0_i32 = arith.constant 0 : i32
    %c0_i32_0 = arith.constant 0 : i32
    %c0_i32_1 = arith.constant 0 : i32
    return %arg0, %c0_i32, %c0_i32_0 : i32, i32, i32
  }
}

</mosaic_0001>

<bundles_post_ra>
// kernel: tpu_custom_call.1
= control target key start
LH: loop header
LB: loop body
LE: loop exit
PB: predicated region body
PF: predicated region fallthrough
CT: control target
= control target key end

     0   :  { %6 = vsyncpa [#allocation3], 0  ;;  %s529_s0 = inlined_call_operand.hbm [shape: f32[8,16,16], index: 0, kind: input, shape index: {}]   ;;  %s530_s1 = inlined_call_operand.vmem [shape: f32[8,18,18], index: 1, kind: output, shape index: {}]  }
   0x1   :  { %8 = vsyncpa [#allocation3 + $0x1], 0  ;;  %s421_s6 = smov 0   ;;  %s423_s7 = smov 0  }
   0x2   :  { %s425_s8 = smov 0   ;;  %s427_s9 = smov 0  }
   0x3 LB: > { %s440_s10 = sadd.s32 4294967295, %s403_s9   ;;  %s443_s11 = sadd.s32 1, %s403_s9   ;;  %s403_s9 = sphi %s427_s9, %s537_s9   ;;  %s399_s8 = sphi %s425_s8, %s536_s8   ;;  %s395_s7 = sphi %s423_s7, %s535_s7   ;;  %s391_s6 = sphi %s421_s6, %s534_s6  }
   0x4   : > { %s18_s12 = ssub.s32 %s403_s9, %s443_s11  ;;  %s21_s13 = sadd.s32 1, %s399_s8 }
   0x5   : > { %p19_p0 = scmp.eq.s32.totalorder %s18_s12, 0  ;;  %p28_p1 = scmp.ne.s32.totalorder %s399_s8, %s395_s7 }
   0x6   : > { %p29_p2 = scmp.eq.s32.totalorder %s403_s9, 0  ;;  %p34_p3 = scmp.ne.s32.totalorder %s395_s7, %s391_s6 }
   0x7   : > { %s453_s14 = scalar_select %p19_p0, %s399_s8, %s21_s13  }
   0x8   : > { %p30_p4 = por %p29_p2, %p28_p1  ;;  %p35_p5 = scmp.eq.s32.totalorder %s440_s10, 0 }
   0x9   : > { %p301_p6 = scmp.lt.s32.totalorder %s403_s9, 8  ;;  %s84_s16 = sand.u32 1, %s399_s8  }
   0xa   : > { %p457_p7 = por %p35_p5, %p34_p3  ;;  %s285_s17 = sshll.u32 %s84_s16, 4 }
   0xb   : > { %s293_s18 = sshll.u32 %s403_s9, 8  ;;  %s88_s22 = scalar_lea.vmem [#allocation2], %s285_s17 }
   0xc   : > { %s466_s21 = scalar_lea.hbm %s529_s0, %s293_s18  ;;  %s95_s23 = sshll.u32 %s88_s22, 4  ;;  %s468_s23 = int_to_ptr.vmem [resolvable:$true] %s95_s23 }
   0xd   : > { %p470_p8 = pnand %p301_p6, %p30_p4  ;;  %s475_s25 = scalar_lea.sflag [#allocation3], %s84_s16 }
   0xe   : > { %s339_s26 = scalar_lea.hbm %s466_s21, 256  ;;  %s344_s29 = scalar_lea.hbm %s529_s0, 2048 }
   0xf   : > { %p340_p10 = scmp.ne.s32.totalorder %s466_s21, %s339_s26  ;;  %p341_p11 = pneg %p470_p8 }
  0x10   : > { %p345_p0 = scmp.lt.u32.totalorder %s466_s21, %s529_s0  ;;  %p346_p1 = scmp.lt.u32.totalorder %s344_s29, %s339_s26 }
  0x11   : > { %p342_p12 = pnand %p341_p11, %p340_p10  ;;  %p348_p3 = scmp.lt.u32.totalorder %s339_s26, %s466_s21 }
  0x12   : > { %p347_p2 = por %p346_p1, %p345_p0 }
  0x13   : > { %p343_p13 = pneg %p342_p12 }
  0x14   : > { %p349_p4 = por %p348_p3, %p347_p2 }
  0x16   : > { %p350_p5 = pnand %p349_p4, %p343_p13 }
  0x18   : > { %353 = shalt.err (!%p350_p5)
}
  0x19   : > { %s354_s3 = scalar_lea.vmem %s468_s23, 256  ;;  %s405_s4 = smov [#allocation2]  }
  0x1a   : > { %p355_p6 = scmp.ne.s32.totalorder %s468_s23, %s354_s3  ;;  %s359_s5 = sshll.u32 %s405_s4, 4  ;;  %s360_s5 = int_to_ptr.vmem [resolvable:$false] %s359_s5 }
  0x1b   : > { %s361_s6 = scalar_lea.vmem %s360_s5, 512  ;;  %p362_p9 = scmp.lt.s32.totalorder %s468_s23, %s360_s5 }
  0x1c   : > { %p357_p10 = pnand %p355_p6, %p341_p11  ;;  %p363_p0 = scmp.lt.s32.totalorder %s361_s6, %s354_s3 }
  0x1e   : > { %p358_p12 = pneg %p357_p10  ;;  %p364_p1 = por %p363_p0, %p362_p9 }
  0x20   : > { %p365_p2 = pnand %p364_p1, %p358_p12 }
  0x22   : > { %368 = shalt.err (!%p365_p2)
}
  0x23   : > { %s406_s12 = smov 128   ;;  %s407_s13 = smov 8  }
  0x24   : > { %300 = dma.hbm_to_vmem [thread:$0]  (!%p470_p8), %s466_s21, 256, %s468_s23, %s475_s25, %s406_s12, %s406_s12, %s407_s13  }
  0x25   : > { %p103_p11 = scmp.lt.s32.totalorder %s403_s9, 9  ;;  %p533_p13 = scmp.ge.s32.totalorder %s403_s9, 1 }
  0x27   : > { %p104_p3 = pnand %p533_p13, %p103_p11 }
  0x28   : > { %s109_s16 = sand.u32 (!%p104_p3), 1, %s395_s7  }
  0x29   : > { %107 = sbr.rel (%p104_p3) target bundleno = 186 (0xba), region = 24  ;;  %s289_s17 = sshll.u32 (!%p104_p3), %s109_s16, 4 }
  0x2a   : > { %s110_s18 = scalar_lea.sflag (!%p104_p3), [#allocation3], %s109_s16  ;;  %s113_s19 = scalar_lea.vmem (!%p104_p3), [#allocation2], %s289_s17 }
  0x30   : > { %386 = dma.done.wait (%p457_p7), %s110_s18, 256  }
  0x31   : > { %388 = vsyncadd (%p457_p7), %s110_s18, 4294967040  ;;  %v150_v0 = vld [vmem:[%s113_s19 + $0xf] sm:$0x1]  ;;  %v137_v1 = vld [vmem:[%s113_s19] sm:$0xff]  ;;  %s408_s20 = smov 1   ;;  %s409_s9 = smov 113  }
  0x32   : > { %152 = vrot.lane.b32.xlu1 %v150_v0, %s408_s20  ;;  %141 = vrot.lane.b32.xlu0 %v137_v1, %s408_s20  ;;  %v157_v2 = vld [vmem:[%s113_s19] sm:$0x1]  ;;  %v138_v3 = vld [vmem:[%s113_s19 + $0x8] sm:$0xff]  ;;  %s410_s15 = smov 17   ;;  %p132_p7 = scmp.lt.s32.totalorder %s440_s10, 7  ;;  %vm155_vm0 = vcmask 131080  }
  0x33   : > { %v203_v4 = vld [vmem:[%s113_s19] sm:$0x1]  ;;  %v189_v5 = vld [vmem:[%s113_s19 + $0xf] sm:$0x1]  ;;  %vm147_vm1 = vcmask 138248   ;;  %vm173_vm2 = vcmask 7168  }
  0x34   : > { %v209_v6 = vld [vmem:[%s113_s19] sm:$0x1]  ;;  %v196_v7 = vld [vmem:[%s113_s19 + $0xf] sm:$0x1]  ;;  %s539_s10 = smov (!%p132_p7, %s440_s10), 7  ;;  %vm194_vm3 = vcmask 0  }
  0x35   : > { %s294_s21 = smul.u32 24, %s539_s10  ;;  %vm186_vm4 = vcmask 146568   ;;  %vm201_vm5 = vcmask 139400  }
  0x36   : > { %159 = vrot.lane.b32.xlu1 %v157_v2, %s408_s20  ;;  %143 = vrot.lane.b32.xlu0 %v138_v3, %s408_s20 }
  0x37   : > { %s136_s24 = scalar_lea.vmem %s530_s1, %s294_s21 }
  0x3a   : > { %169 = vrot.lane.b32.xlu1 %v138_v3, %s409_s9  ;;  %167 = vrot.lane.b32.xlu0 %v137_v1, %s409_s9 }
  0x3e   : > { %205 = vrot.lane.b32.xlu1 %v203_v4, %s409_s9  ;;  %191 = vrot.lane.b32.xlu0 %v189_v5, %s409_s9 }
  0x42   : > { %182 = vrot.lane.b32.xlu1 %v138_v3, %s410_s15  ;;  %180 = vrot.lane.b32.xlu0 %v137_v1, %s410_s15 }
  0x46   : > { %211 = vrot.lane.b32.xlu1 %v209_v6, %s410_s15  ;;  %198 = vrot.lane.b32.xlu0 %v196_v7, %s410_s15 }
  0xa4   : > { %v153_v8 = vpop.permute.xlu1 %152  ;;  %v142_v9 = vpop.permute.xlu0 %141 }
  0xa5   : > { %156 = vst.msk [vmem:[%s136_s24] sm:$0x1] %vm155_vm0, %v153_v8 }
  0xa6   : > { %148 = vst.msk [vmem:[%s136_s24 + $0x1] sm:$0xff] %vm147_vm1, %v142_v9 }
  0xa8   : > { %v160_v10 = vpop.permute.xlu1 %159  ;;  %v144_v11 = vpop.permute.xlu0 %143 }
  0xa9   : > { %162 = vst.msk [vmem:[%s136_s24 + $0x11] sm:$0x1] %vm155_vm0, %v160_v10 }
  0xaa   : > { %149 = vst.msk [vmem:[%s136_s24 + $0x9] sm:$0xff] %vm147_vm1, %v144_v11 }
  0xac   : > { %v170_v12 = vpop.permute.xlu1 %169  ;;  %v168_v13 = vpop.permute.xlu0 %167 }
  0xad   : > { %175 = vst.msk [vmem:[%s136_s24 + $0x9] sm:$0xff] %vm173_vm2, %v170_v12  ;;  %174 = vst.msk [vmem:[%s136_s24 + $0x1] sm:$0xff] %vm173_vm2, %v168_v13 }
  0xb0   : > { %v206_v14 = vpop.permute.xlu1 %205  ;;  %v192_v15 = vpop.permute.xlu0 %191 }
  0xb1   : > { %208 = vst.msk [vmem:[%s136_s24 + $0x11] sm:$0x1] %vm194_vm3, %v206_v14  ;;  %195 = vst.msk [vmem:[%s136_s24] sm:$0x1] %vm194_vm3, %v192_v15 }
  0xb4   : > { %v183_v16 = vpop.permute.xlu1 %182  ;;  %v181_v17 = vpop.permute.xlu0 %180 }
  0xb5   : > { %188 = vst.msk [vmem:[%s136_s24 + $0x9] sm:$0xff] %vm186_vm4, %v183_v16  ;;  %187 = vst.msk [vmem:[%s136_s24 + $0x1] sm:$0xff] %vm186_vm4, %v181_v17 }
  0xb8   : > { %v212_v18 = vpop.permute.xlu1 %211  ;;  %v199_v19 = vpop.permute.xlu0 %198 }
  0xb9   : > { %214 = vst.msk [vmem:[%s136_s24 + $0x11] sm:$0x1] %vm201_vm5, %v212_v18  ;;  %202 = vst.msk [vmem:[%s136_s24] sm:$0x1] %vm201_vm5, %v199_v19 }
  0xba PF: > { %p11_p8 = scmp.ge.s32.totalorder %s443_s11, 10   ;;  %s534_s6 = smov %s395_s7 }
  0xbb   : > { %s535_s7 = smov %s399_s8  ;;  %s536_s8 = smov %s453_s14 }
  0xbc   : > { %s537_s9 = smov %s443_s11  ;;  %13 = sbr.rel (!%p11_p8) target bundleno = 3 (0x3), region = 64 }
  0xc3   :  { %236 = vsyncpa [#allocation3], 1 }
  0xc4   :  { %238 = vsyncpa [#allocation3 + $0x1], 1 }

</bundles_post_ra>
